<compile_context>
chip_gen: v5e
topology: v5e:2x2
jax: 0.10.0
libtpu: 0.0.40
codegen_flags: <defaults>
</compile_context>

<pallas_src>
import functools

import jax
import jax.numpy as jnp
from jax import lax
from jax.experimental import pallas as pl
from jax.experimental.pallas import tpu as pltpu

_LANE = 128


def _round_up(a: int, b: int) -> int:
    return (a + b - 1) // b * b


def _default_num_splits() -> int:
    """2 partial sums only on multi-TensorCore (v7x) chips; 1 on v5e/v6e."""
    try:
        kind = jax.devices()[0].device_kind.lower()
    except Exception:
        return 1
    return 2 if ("v7" in kind or "7x" in kind) else 1


def _mse_reduce_kernel(x_ref, t_ref, out_ref, acc_ref, *, scale, rows, tiles,
                       tiles_per_split, tm, need_tile_guard):
    """Accumulate (x-t)^2 into an (8, TN) VALU-reduced scratch; reduce at end."""
    p = pl.program_id(0)   # split (parallel) axis
    k = pl.program_id(1)   # reduction axis (row tiles within this split)

    @pl.when(k == 0)
    def _():
        acc_ref[...] = jnp.zeros_like(acc_ref)

    d = x_ref[...].astype(jnp.float32) - t_ref[...].astype(jnp.float32)
    sq = d * d

    def accumulate(vals):
        # (TM, TN) -> (TM//8, 8, TN): the reshape does not cross (8,128) vreg
        # tiles, so the sum over the leading axis is pure VALU vreg adds.
        acc_ref[...] += vals.reshape(tm // 8, 8, vals.shape[-1]).sum(axis=0)

    global_tile = p * tiles_per_split + k
    partial = rows % tm          # static Python int: valid rows in last tile

    if partial == 0:
        if need_tile_guard:
            @pl.when(global_tile < tiles)
            def _():
                accumulate(sq)
        else:
            accumulate(sq)
    else:
        is_last = global_tile == tiles - 1
        not_last = jnp.logical_not(is_last)
        if need_tile_guard:
            not_last = jnp.logical_and(not_last, global_tile < tiles)

        @pl.when(not_last)
        def _():
            accumulate(sq)

        @pl.when(is_last)
        def _():
            # Mask the (statically known) partial last row tile.  Rows beyond
            # `partial` hold whatever the clipped DMA left in VMEM.
            row_ids = lax.broadcasted_iota(jnp.int32, sq.shape, 0)
            accumulate(jnp.where(row_ids < partial, sq, jnp.float32(0.0)))

    @pl.when(k == pl.num_programs(1) - 1)
    def _():
        # single small cross-lane reduce (8 vregs) per split, then scale
        out_ref[0, 0] = jnp.sum(acc_ref[...]) * jnp.float32(scale)


def nn_loss_mse(x, t, *, reduction="mean", weight=None, num_splits=None,
                block_bytes=4 << 20, min_pallas_elements=262144):
    """Pallas implementation of NNLoss('MSELoss', reduction, weight).forward(x, t).

    Supports the torch reductions 'mean'/'sum' and zenkai's 'batchmean'.
    Returns a scalar (shape ()) float32, like torch's reduced MSELoss.
    """
    assert x.shape == t.shape

    B = x.shape[0] if x.ndim > 0 else 1
    N = x.size
    w = 1.0 if weight is None else float(weight)

    if N == 0:
        # mean/batchmean of an empty tensor -> nan (matches torch); sum -> 0.
        if reduction in ("mean", "batchmean"):
            return jnp.float32(float("nan"))
        if reduction == "sum":
            return jnp.float32(0.0)
        raise ValueError(f"unsupported reduction: {reduction}")

    if reduction == "mean":
        scale = w / N
    elif reduction == "sum":
        scale = w
    elif reduction == "batchmean":
        scale = w / B
    else:
        # TODO(synk): 'none' / 'samplemeans' / 'samplesums' need per-element /
        # per-sample outputs; only scalar reductions are implemented here.
        raise ValueError(f"unsupported reduction: {reduction}")

    # Lane-dense tile width: largest of {1024,512,256,128} dividing N, so the
    # (rows, TN) view is a free bitcast of the flat tensor (no jnp.pad copy).
    TN = next((c for c in (1024, 512, 256, 128) if N % c == 0), None)

    if TN is None or N < min_pallas_elements:
        # Small or non-128-divisible inputs: a fused XLA reduce reads 2N bytes
        # exactly once, which beats any pad/copy path plus pallas_call overhead.
        # TODO(synk): masked-remainder Pallas path for N % 128 != 0.
        d = x.astype(jnp.float32) - t.astype(jnp.float32)
        return jnp.sum(d * d) * jnp.float32(scale)

    itemsize = jnp.dtype(x.dtype).itemsize
    sub = {4: 8, 2: 16, 1: 32}.get(itemsize, 8)   # sublane packing per dtype

    rows = N // TN
    # ~4 MiB per input block, capped at 1M elements (keeps f32 intermediates
    # and VMEM footprint safe on 64 MiB-VMEM v7x as well as 128 MiB v5e/v6e).
    blk_elems = min(block_bytes // itemsize, 1 << 20)
    tm_target = max(sub, (blk_elems // TN) // sub * sub)
    TM = min(tm_target, _round_up(rows, sub))
    tiles = pl.cdiv(rows, TM)

    # Generation-aware split count: 1 on single-TC v5e/v6e, 2 on v7x.
    if num_splits is None:
        num_splits = _default_num_splits()
    splits = max(1, min(int(num_splits), tiles))
    tiles_per_split = pl.cdiv(tiles, splits)
    need_tile_guard = splits * tiles_per_split != tiles   # odd tiles, 2 splits

    x2 = x.reshape(rows, TN)
    t2 = t.reshape(rows, TN)

    if need_tile_guard:
        # Clamp the overhang iteration onto the last valid tile (no OOB DMA);
        # the kernel's pl.when guard skips its accumulation.
        def in_map(p_, k_):
            return (jnp.minimum(p_ * tiles_per_split + k_, tiles - 1), 0)
    else:
        def in_map(p_, k_):
            return (p_ * tiles_per_split + k_, 0)

    # VMEM: 2 inputs x 2 pipeline buffers x block + f32 intermediate + acc + slack.
    vmem_limit = int(2 * 2 * TM * TN * itemsize + TM * TN * 4
                     + 8 * TN * 4 + (4 << 20))

    kernel = functools.partial(
        _mse_reduce_kernel, scale=scale, rows=rows, tiles=tiles,
        tiles_per_split=tiles_per_split, tm=TM, need_tile_guard=need_tile_guard)

    cost = pl.CostEstimate(
        flops=3 * N,
        transcendentals=0,
        bytes_accessed=2 * N * itemsize + splits * 4,
    )

    out = pl.pallas_call(
        kernel,
        out_shape=jax.ShapeDtypeStruct((splits, 1), jnp.float32),
        grid_spec=pltpu.PrefetchScalarGridSpec(
            num_scalar_prefetch=0,
            grid=(splits, tiles_per_split),
            in_specs=[
                pl.BlockSpec((TM, TN), in_map),
                pl.BlockSpec((TM, TN), in_map),
            ],
            out_specs=pl.BlockSpec((1, 1), lambda p_, k_: (p_, 0),
                                   memory_space=pltpu.SMEM),
            scratch_shapes=[pltpu.VMEM((8, TN), jnp.float32)],
        ),
        compiler_params=pltpu.CompilerParams(
            dimension_semantics=("parallel", "arbitrary"),
            vmem_limit_bytes=vmem_limit,
        ),
        cost_estimate=cost,
    )(x2, t2)

    # combine the (at most 2) per-core partial sums
    return jnp.sum(out)


if __name__ == "__main__":
    key = jax.random.PRNGKey(0)
    kx, kt = jax.random.split(key)

    weight = 0.5

    # --- NCHW inputs, small module-implied shape: NNLoss('MSELoss','mean',0.5).
    # Force the Pallas path (the default threshold would route this to XLA).
    x = jax.random.normal(kx, (2, 4, 16, 16), dtype=jnp.float32)
    t = jax.random.normal(kt, (2, 4, 16, 16), dtype=jnp.float32)
    loss = jax.block_until_ready(
        nn_loss_mse(x, t, reduction="mean", weight=weight, min_pallas_elements=0))
    ref = weight * jnp.mean((x - t) ** 2)
    assert jnp.allclose(loss, ref, rtol=1e-5, atol=1e-6), (loss, ref)

    # 'sum' and 'batchmean' reductions through the kernel.
    loss_sum = jax.block_until_ready(
        nn_loss_mse(x, t, reduction="sum", min_pallas_elements=0))
    assert jnp.allclose(loss_sum, jnp.sum((x - t) ** 2), rtol=1e-5, atol=1e-4)
    loss_bm = jax.block_until_ready(
        nn_loss_mse(x, t, reduction="batchmean", min_pallas_elements=0))
    assert jnp.allclose(loss_bm, jnp.sum((x - t) ** 2) / x.shape[0],
                        rtol=1e-5, atol=1e-4)

    # --- odd (non-128-divisible) + tiny shape: XLA fallback path (no pad copy).
    kx2, kt2 = jax.random.split(kt)
    xo = jax.random.normal(kx2, (2, 3, 7, 5), dtype=jnp.float32)
    to = jax.random.normal(kt2, (2, 3, 7, 5), dtype=jnp.float32)
    loss_o = jax.block_until_ready(nn_loss_mse(xo, to, reduction="mean", weight=weight))
    ref_o = weight * jnp.mean((xo - to) ** 2)
    assert jnp.allclose(loss_o, ref_o, rtol=1e-5, atol=1e-6), (loss_o, ref_o)

    # --- larger aligned tensor: auto Pallas path, multi-tile reduction with a
    # statically-partial last row tile (exercises the in-kernel row mask and,
    # on v7x, the 2-way parallel split).
    kx3, kt3 = jax.random.split(kx2)
    xl = jax.random.normal(kx3, (9, 16, 128, 64), dtype=jnp.float32)
    tl = jax.random.normal(kt3, (9, 16, 128, 64), dtype=jnp.float32)
    loss_l = jax.block_until_ready(nn_loss_mse(xl, tl, reduction="mean", weight=weight))
    ref_l = weight * jnp.mean((xl - tl) ** 2)
    assert jnp.allclose(loss_l, ref_l, rtol=1e-4, atol=1e-5), (loss_l, ref_l)

    print("KERNEL_OK")
</pallas_src>

<mosaic_0001>
module attributes {stable_mosaic.version = 11 : i64} {
  func.func @_mse_reduce_kernel(%arg0: i32, %arg1: i32, %arg2: memref<8x1024xf32, #tpu.memory_space<vmem>>, %arg3: memref<8x1024xf32, #tpu.memory_space<vmem>>, %arg4: memref<1x1xf32, #tpu.memory_space<smem>>, %arg5: memref<8x1024xf32, #tpu.memory_space<vmem>>) attributes {dimension_semantics = [#tpu.dimension_semantics<parallel>, #tpu.dimension_semantics<arbitrary>], iteration_bounds = array<i64: 1, 1>, scalar_prefetch = 0 : i64, scratch_operands = 1 : i64, tpu.core_type = #tpu.core_type<tc>, window_params = [{transform_indices = @transform_0, window_bounds = array<i64: 8, 1024>}, {transform_indices = @transform_1, window_bounds = array<i64: 8, 1024>}, {transform_indices = @transform_2, window_bounds = array<i64: 1, 1>}]} {
    %c0_i32 = arith.constant 0 : i32
    %0 = arith.cmpi eq, %arg1, %c0_i32 : i32
    %1 = arith.extui %0 : i1 to i32
    %c0_i32_0 = arith.constant 0 : i32
    %2 = arith.cmpi ne, %1, %c0_i32_0 : i32
    scf.if %2 {
      %cst = arith.constant 0.000000e+00 : f32
      %18 = vector.broadcast %cst : f32 to vector<8x1024xf32>
      %c0_9 = arith.constant 0 : index
      %c0_10 = arith.constant 0 : index
      %19 = vector.load %arg5[%c0_9, %c0_10] : memref<8x1024xf32, #tpu.memory_space<vmem>>, vector<8x1024xf32>
      tpu.vector_store %arg5[%c0_9, %c0_10], %18 {strides = array<i32>} : memref<8x1024xf32, #tpu.memory_space<vmem>>, vector<8x1024xf32>,
    } else {
    }
    %c0 = arith.constant 0 : index
    %c0_1 = arith.constant 0 : index
    %3 = vector.load %arg2[%c0, %c0_1] : memref<8x1024xf32, #tpu.memory_space<vmem>>, vector<8x1024xf32>
    %c0_2 = arith.constant 0 : index
    %c0_3 = arith.constant 0 : index
    %4 = vector.load %arg3[%c0_2, %c0_3] : memref<8x1024xf32, #tpu.memory_space<vmem>>, vector<8x1024xf32>
    %5 = arith.subf %3, %4 : vector<8x1024xf32>
    %6 = arith.mulf %5, %5 : vector<8x1024xf32>
    %c1_i32 = arith.constant 1 : i32
    %7 = arith.muli %arg0, %c1_i32 : i32
    %8 = arith.addi %7, %arg1 : i32
    %c0_i32_4 = arith.constant 0 : i32
    %9 = arith.cmpi eq, %8, %c0_i32_4 : i32
    %true = arith.constant true
    %10 = arith.xori %9, %true : i1
    %11 = arith.extui %10 : i1 to i32
    %c0_i32_5 = arith.constant 0 : i32
    %12 = arith.cmpi ne, %11, %c0_i32_5 : i32
    scf.if %12 {
      %c0_9 = arith.constant 0 : index
      %c0_10 = arith.constant 0 : index
      %18 = vector.load %arg5[%c0_9, %c0_10] : memref<8x1024xf32, #tpu.memory_space<vmem>>, vector<8x1024xf32>
      %19 = vector.shape_cast %6 : vector<8x1024xf32> to vector<1x8x1024xf32>
      %cst = arith.constant dense<0.000000e+00> : vector<8x1024xf32>
      %20 = vector.multi_reduction <add>, %19, %cst [0] : vector<1x8x1024xf32> to vector<8x1024xf32>
      %21 = arith.addf %18, %20 : vector<8x1024xf32>
      %c0_11 = arith.constant 0 : index
      %c0_12 = arith.constant 0 : index
      %22 = vector.load %arg5[%c0_11, %c0_12] : memref<8x1024xf32, #tpu.memory_space<vmem>>, vector<8x1024xf32>
      tpu.vector_store %arg5[%c0_11, %c0_12], %21 {strides = array<i32>} : memref<8x1024xf32, #tpu.memory_space<vmem>>, vector<8x1024xf32>,
    } else {
    }
    %13 = arith.extui %9 : i1 to i32
    %c0_i32_6 = arith.constant 0 : i32
    %14 = arith.cmpi ne, %13, %c0_i32_6 : i32
    scf.if %14 {
      %18 = tpu.iota {dimensions = array<i32: 0>} : vector<8x1024xi32>
      %c2_i32 = arith.constant 2 : i32
      %19 = vector.broadcast %c2_i32 : i32 to vector<8x1024xi32>
      %20 = arith.cmpi slt, %18, %19 : vector<8x1024xi32>
      %cst = arith.constant 0.000000e+00 : f32
      %21 = vector.broadcast %cst : f32 to vector<8x1024xf32>
      %22 = arith.select %20, %6, %21 : vector<8x1024xi1>, vector<8x1024xf32>
      %c0_9 = arith.constant 0 : index
      %c0_10 = arith.constant 0 : index
      %23 = vector.load %arg5[%c0_9, %c0_10] : memref<8x1024xf32, #tpu.memory_space<vmem>>, vector<8x1024xf32>
      %24 = vector.shape_cast %22 : vector<8x1024xf32> to vector<1x8x1024xf32>
      %cst_11 = arith.constant dense<0.000000e+00> : vector<8x1024xf32>
      %25 = vector.multi_reduction <add>, %24, %cst_11 [0] : vector<1x8x1024xf32> to vector<8x1024xf32>
      %26 = arith.addf %23, %25 : vector<8x1024xf32>
      %c0_12 = arith.constant 0 : index
      %c0_13 = arith.constant 0 : index
      %27 = vector.load %arg5[%c0_12, %c0_13] : memref<8x1024xf32, #tpu.memory_space<vmem>>, vector<8x1024xf32>
      tpu.vector_store %arg5[%c0_12, %c0_13], %26 {strides = array<i32>} : memref<8x1024xf32, #tpu.memory_space<vmem>>, vector<8x1024xf32>,
    } else {
    }
    %c0_i32_7 = arith.constant 0 : i32
    %15 = arith.cmpi eq, %arg1, %c0_i32_7 : i32
    %16 = arith.extui %15 : i1 to i32
    %c0_i32_8 = arith.constant 0 : i32
    %17 = arith.cmpi ne, %16, %c0_i32_8 : i32
    scf.if %17 {
      %c0_9 = arith.constant 0 : index
      %c0_10 = arith.constant 0 : index
      %18 = vector.load %arg5[%c0_9, %c0_10] : memref<8x1024xf32, #tpu.memory_space<vmem>>, vector<8x1024xf32>
      %19 = vector.shape_cast %18 : vector<8x1024xf32> to vector<1x8x1024xf32>
      %cst = arith.constant dense<0.000000e+00> : vector<1xf32>
      %20 = vector.multi_reduction <add>, %19, %cst [1, 2] : vector<1x8x1024xf32> to vector<1xf32>
      %21 = vector.shape_cast %20 : vector<1xf32> to vector<1x1x1xf32>
      %22 = vector.extract %21[0, 0, 0] : f32 from vector<1x1x1xf32>
      %cst_11 = arith.constant 2.44140625E-4 : f32
      %23 = arith.mulf %22, %cst_11 : f32
      %c0_12 = arith.constant 0 : index
      %c0_13 = arith.constant 0 : index
      %24 = memref.load %arg4[%c0_12, %c0_13] : memref<1x1xf32, #tpu.memory_space<smem>>
      memref.store %23, %arg4[%c0_12, %c0_13] : memref<1x1xf32, #tpu.memory_space<smem>>
    } else {
    }
    return
  }
  func.func @transform_0(%arg0: i32, %arg1: i32) -> (i32, i32) {
    %c1_i32 = arith.constant 1 : i32
    %0 = arith.muli %arg0, %c1_i32 : i32
    %1 = arith.addi %0, %arg1 : i32
    %c0_i32 = arith.constant 0 : i32
    %c0_i32_0 = arith.constant 0 : i32
    return %1, %c0_i32 : i32, i32
  }
  func.func @transform_1(%arg0: i32, %arg1: i32) -> (i32, i32) {
    %c1_i32 = arith.constant 1 : i32
    %0 = arith.muli %arg0, %c1_i32 : i32
    %1 = arith.addi %0, %arg1 : i32
    %c0_i32 = arith.constant 0 : i32
    %c0_i32_0 = arith.constant 0 : i32
    return %1, %c0_i32 : i32, i32
  }
  func.func @transform_2(%arg0: i32, %arg1: i32) -> (i32, i32) {
    %c0_i32 = arith.constant 0 : i32
    %c0_i32_0 = arith.constant 0 : i32
    return %arg0, %c0_i32 : i32, i32
  }
}

</mosaic_0001>

<bundles_post_ra>
// kernel: tpu_custom_call.1
= control target key start
LH: loop header
LB: loop body
LE: loop exit
PB: predicated region body
PF: predicated region fallthrough
CT: control target
= control target key end

     0   :  { %7 = vsyncpa [#allocation4], 0  ;;  %s439_s0 = inlined_call_operand.hbm [shape: f32[2,1024], index: 0, kind: input, shape index: {}]   ;;  %s440_s1 = inlined_call_operand.hbm [shape: f32[2,1024], index: 1, kind: input, shape index: {}]   ;;  %s441_s2 = inlined_call_operand.hbm [shape: f32[1,1], index: 2, kind: output, shape index: {}]  }
   0x1   :  { %8 = vsyncpa [#allocation7], 0 }
   0x2   :  { %9 = vsyncpa [#allocation5], 0 }
   0x3   :  { %19 = vsyncadd [#allocation4], 768  ;;  %s25_s11 = sshll.u32 %s439_s0, 4  ;;  %s402_s12 = smov [#allocation3]   ;;  %s26_s11 = int_to_ptr.hbm [resolvable:$true] %s25_s11 }
   0x4   :  { %s27_s13 = sshll.u32 %s402_s12, 4  ;;  %s403_s14 = smov 256   ;;  %s28_s13 = int_to_ptr.vmem [resolvable:$true] %s27_s13 }
   0x5   :  { %s404_s15 = smov 16  }
   0x6   :  { %33 = dma.hbm_to_vmem [thread:$0]  %s26_s11, 256, %s28_s13, [#allocation4], %s403_s14, %s403_s14, %s404_s15  }
   0x7   :  { %43 = vsyncadd [#allocation7], 768  ;;  %s49_s18 = sshll.u32 %s440_s1, 4  ;;  %s405_s19 = smov [#allocation6]   ;;  %s50_s18 = int_to_ptr.hbm [resolvable:$true] %s49_s18 }
   0x8   :  { %s51_s20 = sshll.u32 %s405_s19, 4  ;;  %s52_s20 = int_to_ptr.vmem [resolvable:$true] %s51_s20 }
   0x9   :  { %57 = dma.hbm_to_vmem [thread:$0]  %s50_s18, 256, %s52_s20, [#allocation7], %s403_s14, %s403_s14, %s404_s15  }
   0xa   :  { %396 = dma.done.wait [#allocation4], 1024  }
   0xb   :  { %397 = vsyncadd [#allocation4], 4294966272 }
   0xc   :  { %398 = dma.done.wait [#allocation7], 1024  }
   0xd   :  { %399 = vsyncadd [#allocation7], 4294966272  ;;  %v88_v0 = vld [vmem:[#allocation3] sm:$0xff]  ;;  %v89_v1 = vld [vmem:[#allocation3 + $0x8] sm:$0xff]  ;;  %v200_v30 = vlaneseq  ;;  %s317_s21 = sshll.u32 %s441_s2, 4  ;;  %s406_s24 = smov [#allocation8]   ;;  %s318_s21 = int_to_ptr.hbm [resolvable:$true] %s317_s21 }
   0xe   :  { %v90_v2 = vld [vmem:[#allocation3 + $0x10] sm:$0xff]  ;;  %v91_v3 = vld [vmem:[#allocation3 + $0x18] sm:$0xff]  ;;  %v92_v4 = vld [vmem:[#allocation3 + $0x20] sm:$0xff] }
   0xf   :  { %v93_v5 = vld [vmem:[#allocation3 + $0x28] sm:$0xff]  ;;  %v94_v6 = vld [vmem:[#allocation3 + $0x30] sm:$0xff]  ;;  %v95_v7 = vld [vmem:[#allocation3 + $0x38] sm:$0xff]  ;;  %v201_v33 = vshrl.u32 %v200_v30, 7 }
  0x10   :  { %v96_v8 = vld [vmem:[#allocation6] sm:$0xff]  ;;  %v97_v9 = vld [vmem:[#allocation6 + $0x8] sm:$0xff]  ;;  %v98_v10 = vld [vmem:[#allocation6 + $0x10] sm:$0xff] }
  0x11   :  { %v99_v11 = vld [vmem:[#allocation6 + $0x18] sm:$0xff]  ;;  %v104_v12 = vsub.f32 %v88_v0, %v96_v8  ;;  %v100_v13 = vld [vmem:[#allocation6 + $0x20] sm:$0xff]  ;;  %v101_v14 = vld [vmem:[#allocation6 + $0x28] sm:$0xff]  ;;  %v105_v16 = vsub.f32 %v89_v1, %v97_v9  ;;  %v106_v17 = vsub.f32 %v90_v2, %v98_v10  ;;  %vm202_vm0 = vcmp.lt.s32.totalorder %v201_v33, 2 }
  0x12   :  { %v102_v15 = vld [vmem:[#allocation6 + $0x30] sm:$0xff]  ;;  %v107_v18 = vsub.f32 %v91_v3, %v99_v11  ;;  %v103_v19 = vld [vmem:[#allocation6 + $0x38] sm:$0xff]  ;;  %v108_v20 = vsub.f32 %v92_v4, %v100_v13  ;;  %v109_v21 = vsub.f32 %v93_v5, %v101_v14 }
  0x13   :  { %v110_v22 = vsub.f32 %v94_v6, %v102_v15  ;;  %v112_v23 = vmul.f32 %v104_v12, %v104_v12  ;;  %v111_v24 = vsub.f32 %v95_v7, %v103_v19  ;;  %v114_v25 = vmul.f32 %v106_v17, %v106_v17 }
  0x14   :  { %v113_v26 = vmul.f32 %v105_v16, %v105_v16  ;;  %v116_v27 = vmul.f32 %v108_v20, %v108_v20  ;;  %v115_v29 = vmul.f32 %v107_v18, %v107_v18  ;;  %v117_v31 = vmul.f32 %v109_v21, %v109_v21 }
  0x15   :  { %v118_v28 = vmul.f32 %v110_v22, %v110_v22  ;;  %211 = vst [vmem:[#allocation1] ss:$4 sm:$0xff] %v112_v23  ;;  %v119_v32 = vmul.f32 %v111_v24, %v111_v24 }
  0x16   :  { %213 = vst [vmem:[#allocation1 + $0x1] ss:$4 sm:$0xff] %v114_v25 }
  0x17   :  { %215 = vst [vmem:[#allocation1 + $0x2] ss:$4 sm:$0xff] %v116_v27 }
  0x18   :  { %217 = vst [vmem:[#allocation1 + $0x3] ss:$4 sm:$0xff] %v118_v28 }
  0x19   :  { %219 = vst [vmem:[#allocation1 + $0x20] ss:$4 sm:$0xff] %v113_v26 }
  0x1a   :  { %221 = vst [vmem:[#allocation1 + $0x21] ss:$4 sm:$0xff] %v115_v29 }
  0x1b   :  { %223 = vst [vmem:[#allocation1 + $0x22] ss:$4 sm:$0xff] %v117_v31 }
  0x1c   :  { %225 = vst [vmem:[#allocation1 + $0x23] ss:$4 sm:$0xff] %v119_v32 }
  0x1f   :  { %v226_v34 = vld.sshfl [vmem:[#allocation1] sm:$0xff pattern:$0x73625140]  ;;  %v227_v35 = vld.sshfl [vmem:[#allocation1 + $0x8] sm:$0xff pattern:$0x73625140] }
  0x20   :  { %v228_v36 = vld.sshfl [vmem:[#allocation1 + $0x10] sm:$0xff pattern:$0x73625140]  ;;  %v229_v37 = vld.sshfl [vmem:[#allocation1 + $0x18] sm:$0xff pattern:$0x73625140] }
  0x21   :  { %v242_v38 = vsel %vm202_vm0, %v226_v34, 0.0  ;;  %v243_v39 = vsel %vm202_vm0, %v227_v35, 0.0  ;;  %v244_v40 = vsel %vm202_vm0, %v228_v36, 0.0  ;;  %v245_v43 = vsel %vm202_vm0, %v229_v37, 0.0 }
  0x22   :  { %v293_v41 = vadd.f32 %v243_v39, %v242_v38 }
  0x23   :  { %v230_v42 = vld.sshfl [vmem:[#allocation1 + $0x20] sm:$0xff pattern:$0x73625140]  ;;  %v231_v44 = vld.sshfl [vmem:[#allocation1 + $0x28] sm:$0xff pattern:$0x73625140] }
  0x24   :  { %v294_v45 = vadd.f32 %v293_v41, %v244_v40  ;;  %v246_v46 = vsel %vm202_vm0, %v230_v42, 0.0  ;;  %v232_v47 = vld.sshfl [vmem:[#allocation1 + $0x30] sm:$0xff pattern:$0x73625140]  ;;  %v247_v49 = vsel %vm202_vm0, %v231_v44, 0.0 }
  0x25   :  { %v233_v50 = vld.sshfl [vmem:[#allocation1 + $0x38] sm:$0xff pattern:$0x73625140]  ;;  %v248_v52 = vsel %vm202_vm0, %v232_v47, 0.0 }
  0x26   :  { %v295_v48 = vadd.f32 %v294_v45, %v245_v43  ;;  %v249_v54 = vsel %vm202_vm0, %v233_v50, 0.0 }
  0x28   :  { %v296_v51 = vadd.f32 %v295_v48, %v246_v46 }
  0x2a   :  { %v297_v53 = vadd.f32 %v296_v51, %v247_v49 }
  0x2c   :  { %v298_v55 = vadd.f32 %v297_v53, %v248_v52 }
  0x2e   :  { %v299_v56 = vadd.f32 %v298_v55, %v249_v54 }
  0x30   :  { %300 = vadd.xlane.f32.xlu0 %v299_v56 }
  0xa3   :  { %v301_v57 = vpop.xlane.xlu0 %300 }
  0xa4   :  { %v302_v58 = vrot.slane %v301_v57, 4 }
  0xa6   :  { %v303_v59 = vadd.f32 %v302_v58, %v301_v57 }
  0xa8   :  { %v304_v60 = vrot.slane %v303_v59, 2 }
  0xaa   :  { %v305_v61 = vadd.f32 %v304_v60, %v303_v59 }
  0xac   :  { %v306_v62 = vrot.slane %v305_v61, 1 }
  0xae   :  { %v307_v63 = vadd.f32 %v306_v62, %v305_v61 }
  0xb0   :  { %329 = vpush %v307_v63 }
  0xe1   :  { %s330_s22 = spop %329 }
  0xe2   :  { %s309_s23 = smul.f32 0.00024414063, %s330_s22 }
  0xe4   :  { %311 = sst [smem:[#allocation8]] %s309_s23 }
  0xe5   :  { %320 = dma.smem_to_hbm %s406_s24, 16, %s318_s21, [#allocation5]  }
  0xe6   :  { %400 = dma.done.wait [#allocation5], 16  }
  0xe7   :  { %401 = vsyncadd [#allocation5], 4294967280 }
  0xe8   :  { %325 = sfence }
  0xe9   :  { %326 = vsyncpa [#allocation4], 1 }
  0xea   :  { %327 = vsyncpa [#allocation7], 1 }
  0xeb   :  { %328 = vsyncpa [#allocation5], 1 }

</bundles_post_ra>
